<compile_context>
chip_gen: v7x
topology: tpu7x:2x2x1
jax: 0.10.0
libtpu: 0.0.40
codegen_flags: <defaults>
</compile_context>

<pallas_src>
import functools

import jax
import jax.numpy as jnp
from jax.experimental import pallas as pl
from jax.experimental.pallas import tpu as pltpu

WIDTH = 32
LENGTH = 24   # divisible by 2 and 3 (length//2, length//3 used by the module)
LANES = 128

# ---- static packing layout -------------------------------------------------
# Each weight lives in its own zero-padded (128, 128) block of one slab:
#   conv : rows [W : W+3L) of its block (matches points lanes of the x-slab)
#   t45  : rows [0 : W)    of its block (matches tmp lanes; W45 = W_t4 @ W_t5b)
#   rest : rows [0 : in_dim)
# Bias rows are appended after the last block (one 128-lane row per layer).
_BLOCKS = ("conv", "enc1", "enc2", "enc3", "dec1", "dec2",
           "t1", "t2", "t3", "t5a", "t45")
_BLK = {name: i for i, name in enumerate(_BLOCKS)}
_BIAS_NAMES = ("enc1", "enc2", "enc3", "dec1", "dec2", "t1", "t2", "t3", "t5")
_BIAS = {name: i for i, name in enumerate(_BIAS_NAMES)}
_BIAS_BASE = len(_BLOCKS) * LANES          # 1408
_TOTAL_ROWS = _BIAS_BASE + 16              # 1424 rows, 8-aligned (~729 KB f32)
_CHAIN = ("enc1", "enc2", "enc3", "dec1", "dec2", "t1", "t2", "t3")


def _kernel(x_ref, w_ref, out_ref):
    x = x_ref[...]                                            # (B_tile, 128)

    def mm(a, name):
        blk = _BLK[name]
        # static, 128-aligned ref slice: free view, uniform (B,128)x(128,128) dot
        return jnp.dot(a, w_ref[blk * LANES:(blk + 1) * LANES, :],
                       preferred_element_type=jnp.float32)

    def bias(name):
        r = _BIAS_BASE + _BIAS[name]
        return w_ref[r:r + 1, :]                              # (1, 128)

    # point_cnd = tanh(conv1d(points)) -> single output position == matvec
    pc = jnp.tanh(mm(x, "conv"))

    # encoder / decoder / transformer chain (dropouts identity in eval mode)
    for name in _CHAIN:
        pc = jnp.tanh(mm(pc, name) + bias(name))

    # tanh(transformer5(cat(point_cnd2, tmp1))) without a concat:
    # t5 split into t5a (acts on pc) and host-folded t45 = t4 @ t5b (acts on tmp
    # lanes of the input slab); b_t4 @ t5b already folded into bias("t5").
    # Keep the two dots adjacent so v7x can accumulate in the MRB.
    out_ref[...] = jnp.tanh(mm(pc, "t5a") + mm(x, "t45") + bias("t5"))


@functools.partial(jax.jit, static_argnames=("b_tile",))
def _run(x_slab, w_slab, b_tile):
    n_tiles = x_slab.shape[0] // b_tile
    return pl.pallas_call(
        _kernel,
        out_shape=jax.ShapeDtypeStruct((x_slab.shape[0], LANES), jnp.float32),
        grid=(n_tiles,),
        in_specs=[
            pl.BlockSpec((b_tile, LANES), lambda i: (i, 0)),          # x tile
            pl.BlockSpec((_TOTAL_ROWS, LANES), lambda i: (0, 0)),     # resident W
        ],
        out_specs=pl.BlockSpec((b_tile, LANES), lambda i: (i, 0)),
        compiler_params=pltpu.CompilerParams(
            dimension_semantics=("parallel",)),                       # megacore split
    )(x_slab, w_slab)


def make_params(width, length):
    """Deterministic synthetic parameters in (in, out) layout; Conv1d weight
    flattened so out = points.flatten() @ Wflat with
    Wflat[c_in*3 + k, c_out] = W[c_out, c_in, k]."""
    key = jax.random.PRNGKey(42)
    keys = jax.random.split(key, 24)
    ki = iter(range(24))

    def lin(i, o):
        w = jax.random.normal(keys[next(ki)], (i, o), jnp.float32) * 0.1
        b = jax.random.normal(keys[next(ki)], (o,), jnp.float32) * 0.01
        return w, b

    wconv = jax.random.normal(keys[next(ki)], (length, length, 3), jnp.float32) * 0.1
    wconv_flat = jnp.transpose(wconv, (1, 2, 0)).reshape(length * 3, length)

    p = {"conv": (wconv_flat, None)}
    p["enc1"] = lin(length, length // 2)
    p["enc2"] = lin(length // 2, length // 3)
    p["enc3"] = lin(length // 3, length // 3)
    p["dec1"] = lin(length // 3, length // 2)
    p["dec2"] = lin(length // 2, length)
    p["t1"] = lin(length, width * 2)
    p["t2"] = lin(width * 2, width)
    p["t3"] = lin(width, width // 2)
    p["t4"] = lin(width, width // 2)
    p["t5"] = lin(width, width)
    return p


def pack_weights(params, width, length):
    """One row-stacked, 128-lane, zero-padded weight+bias slab (single DMA,
    kept resident in VMEM across all batch tiles)."""
    # Host-side fold of the linear t4 -> t5b pair (exact: no tanh between them).
    t4w, t4b = params["t4"]
    t5w, t5b = params["t5"]
    t5a_w = t5w[: width // 2, :]          # multiplies point_cnd2 (cat first half)
    t5b_w = t5w[width // 2:, :]           # multiplies tmp1       (cat second half)
    w45 = t4w @ t5b_w                     # (width, width)
    b5 = t5b + t4b @ t5b_w                # folded bias

    mats = {
        "conv": (width, params["conv"][0]),   # (row offset in block, matrix)
        "enc1": (0, params["enc1"][0]),
        "enc2": (0, params["enc2"][0]),
        "enc3": (0, params["enc3"][0]),
        "dec1": (0, params["dec1"][0]),
        "dec2": (0, params["dec2"][0]),
        "t1": (0, params["t1"][0]),
        "t2": (0, params["t2"][0]),
        "t3": (0, params["t3"][0]),
        "t5a": (0, t5a_w),
        "t45": (0, w45),
    }
    biases = {name: params[name][1] for name in
              ("enc1", "enc2", "enc3", "dec1", "dec2", "t1", "t2", "t3")}
    biases["t5"] = b5

    slab = jnp.zeros((_TOTAL_ROWS, LANES), jnp.float32)
    for name, (off, w) in mats.items():
        r = _BLK[name] * LANES + off
        slab = slab.at[r:r + w.shape[0], :w.shape[1]].set(w)
    for name, b in biases.items():
        slab = slab.at[_BIAS_BASE + _BIAS[name], :b.shape[0]].set(b)
    return slab


def encoder_layer_cnn(tmp_b, points_b, w_slab, *, b_tile=128,
                      width=WIDTH, length=LENGTH):
    """Batched forward. tmp_b: (B, width), points_b: (B, length, 3)."""
    B = tmp_b.shape[0]
    b_pad = ((B + b_tile - 1) // b_tile) * b_tile
    x_slab = jnp.zeros((b_pad, LANES), jnp.float32)
    x_slab = x_slab.at[:B, :width].set(tmp_b.astype(jnp.float32))
    x_slab = x_slab.at[:B, width:width + 3 * length].set(
        points_b.reshape(B, -1).astype(jnp.float32))
    out = _run(x_slab, w_slab, b_tile)            # (b_pad, 128) lane-dense
    return out[:B, :width]


def reference_single(tmp, points, params):
    """Pure-JAX reference replicating the PyTorch forward (eval-mode dropout),
    WITHOUT the t4->t5b fold, to validate the fold's exactness."""
    t4w, t4b = params["t4"]
    tmp1 = tmp @ t4w + t4b
    pc = jnp.tanh(points.reshape(-1) @ params["conv"][0])
    for name in ("enc1", "enc2", "enc3", "dec1", "dec2", "t1", "t2", "t3"):
        w, b = params[name]
        pc = jnp.tanh(pc @ w + b)
    t5w, t5b = params["t5"]
    return jnp.tanh(jnp.concatenate([pc, tmp1]) @ t5w + t5b)


if __name__ == "__main__":
    B = 16            # small demo batch; grid=(2,) with b_tile=8 exercises the pipeline
    B_TILE = 8

    key = jax.random.PRNGKey(0)
    k1, k2 = jax.random.split(key)
    tmp = jax.random.normal(k1, (B, WIDTH), jnp.float32)         # (B, width)
    points = jax.random.normal(k2, (B, LENGTH, 3), jnp.float32)  # (B, length, 3)

    params = make_params(WIDTH, LENGTH)
    w_slab = pack_weights(params, WIDTH, LENGTH)                 # (1424, 128)

    out = encoder_layer_cnn(tmp, points, w_slab, b_tile=B_TILE)
    out = jax.block_until_ready(out)

    ref = jax.vmap(lambda t, p: reference_single(t, p, params))(tmp, points)
    assert out.shape == (B, WIDTH), out.shape
    # Slightly loosened vs. 1e-5: the host-side t4->t5b fold reassociates fp ops.
    assert jnp.allclose(out, ref, atol=1e-4, rtol=1e-4), (out, ref)
    print("KERNEL_OK")
</pallas_src>

<mosaic_0001>
module attributes {stable_mosaic.version = 11 : i64} {
  func.func @_kernel(%arg0: i32, %arg1: memref<8x128xf32, #tpu.memory_space<vmem>>, %arg2: memref<1424x128xf32, #tpu.memory_space<vmem>>, %arg3: memref<8x128xf32, #tpu.memory_space<vmem>>) attributes {dimension_semantics = [#tpu.dimension_semantics<parallel>], iteration_bounds = array<i64: 2>, scalar_prefetch = 0 : i64, scratch_operands = 0 : i64, tpu.core_type = #tpu.core_type<tc>, window_params = [{transform_indices = @transform_0, window_bounds = array<i64: 8, 128>}, {pipeline_mode = #tpu.pipeline_mode<synchronous>, transform_indices = @transform_1, window_bounds = array<i64: 1424, 128>}, {transform_indices = @transform_2, window_bounds = array<i64: 8, 128>}]} {
    %c0 = arith.constant 0 : index
    %c0_0 = arith.constant 0 : index
    %0 = vector.load %arg1[%c0, %c0_0] : memref<8x128xf32, #tpu.memory_space<vmem>>, vector<8x128xf32>
    %c0_1 = arith.constant 0 : index
    %c0_2 = arith.constant 0 : index
    %1 = vector.load %arg2[%c0_1, %c0_2] : memref<1424x128xf32, #tpu.memory_space<vmem>>, vector<128x128xf32>
    %cst = arith.constant dense<0.000000e+00> : vector<8x128xf32>
    %2 = tpu.matmul %0, %1, %cst {dimension_numbers = #tpu.dot_dimension_numbers<[1], [0], [0], [1], [0, 0, 1, 1], [], []>} : vector<8x128xf32>, vector<128x128xf32>, vector<8x128xf32> -> vector<8x128xf32>
    %3 = math.tanh %2 : vector<8x128xf32>
    %c128 = arith.constant 128 : index
    %c0_3 = arith.constant 0 : index
    %4 = vector.load %arg2[%c128, %c0_3] : memref<1424x128xf32, #tpu.memory_space<vmem>>, vector<128x128xf32>
    %cst_4 = arith.constant dense<0.000000e+00> : vector<8x128xf32>
    %5 = tpu.matmul %3, %4, %cst_4 {dimension_numbers = #tpu.dot_dimension_numbers<[1], [0], [0], [1], [0, 0, 1, 1], [], []>} : vector<8x128xf32>, vector<128x128xf32>, vector<8x128xf32> -> vector<8x128xf32>
    %c1408 = arith.constant 1408 : index
    %c0_5 = arith.constant 0 : index
    %6 = vector.load %arg2[%c1408, %c0_5] : memref<1424x128xf32, #tpu.memory_space<vmem>>, vector<1x128xf32>
    %7 = vector.broadcast %6 : vector<1x128xf32> to vector<8x128xf32>
    %8 = arith.addf %5, %7 : vector<8x128xf32>
    %9 = math.tanh %8 : vector<8x128xf32>
    %c256 = arith.constant 256 : index
    %c0_6 = arith.constant 0 : index
    %10 = vector.load %arg2[%c256, %c0_6] : memref<1424x128xf32, #tpu.memory_space<vmem>>, vector<128x128xf32>
    %cst_7 = arith.constant dense<0.000000e+00> : vector<8x128xf32>
    %11 = tpu.matmul %9, %10, %cst_7 {dimension_numbers = #tpu.dot_dimension_numbers<[1], [0], [0], [1], [0, 0, 1, 1], [], []>} : vector<8x128xf32>, vector<128x128xf32>, vector<8x128xf32> -> vector<8x128xf32>
    %c1409 = arith.constant 1409 : index
    %c0_8 = arith.constant 0 : index
    %12 = vector.load %arg2[%c1409, %c0_8] : memref<1424x128xf32, #tpu.memory_space<vmem>>, vector<1x128xf32>
    %13 = vector.broadcast %12 : vector<1x128xf32> to vector<8x128xf32>
    %14 = arith.addf %11, %13 : vector<8x128xf32>
    %15 = math.tanh %14 : vector<8x128xf32>
    %c384 = arith.constant 384 : index
    %c0_9 = arith.constant 0 : index
    %16 = vector.load %arg2[%c384, %c0_9] : memref<1424x128xf32, #tpu.memory_space<vmem>>, vector<128x128xf32>
    %cst_10 = arith.constant dense<0.000000e+00> : vector<8x128xf32>
    %17 = tpu.matmul %15, %16, %cst_10 {dimension_numbers = #tpu.dot_dimension_numbers<[1], [0], [0], [1], [0, 0, 1, 1], [], []>} : vector<8x128xf32>, vector<128x128xf32>, vector<8x128xf32> -> vector<8x128xf32>
    %c1410 = arith.constant 1410 : index
    %c0_11 = arith.constant 0 : index
    %18 = vector.load %arg2[%c1410, %c0_11] : memref<1424x128xf32, #tpu.memory_space<vmem>>, vector<1x128xf32>
    %19 = vector.broadcast %18 : vector<1x128xf32> to vector<8x128xf32>
    %20 = arith.addf %17, %19 : vector<8x128xf32>
    %21 = math.tanh %20 : vector<8x128xf32>
    %c512 = arith.constant 512 : index
    %c0_12 = arith.constant 0 : index
    %22 = vector.load %arg2[%c512, %c0_12] : memref<1424x128xf32, #tpu.memory_space<vmem>>, vector<128x128xf32>
    %cst_13 = arith.constant dense<0.000000e+00> : vector<8x128xf32>
    %23 = tpu.matmul %21, %22, %cst_13 {dimension_numbers = #tpu.dot_dimension_numbers<[1], [0], [0], [1], [0, 0, 1, 1], [], []>} : vector<8x128xf32>, vector<128x128xf32>, vector<8x128xf32> -> vector<8x128xf32>
    %c1411 = arith.constant 1411 : index
    %c0_14 = arith.constant 0 : index
    %24 = vector.load %arg2[%c1411, %c0_14] : memref<1424x128xf32, #tpu.memory_space<vmem>>, vector<1x128xf32>
    %25 = vector.broadcast %24 : vector<1x128xf32> to vector<8x128xf32>
    %26 = arith.addf %23, %25 : vector<8x128xf32>
    %27 = math.tanh %26 : vector<8x128xf32>
    %c640 = arith.constant 640 : index
    %c0_15 = arith.constant 0 : index
    %28 = vector.load %arg2[%c640, %c0_15] : memref<1424x128xf32, #tpu.memory_space<vmem>>, vector<128x128xf32>
    %cst_16 = arith.constant dense<0.000000e+00> : vector<8x128xf32>
    %29 = tpu.matmul %27, %28, %cst_16 {dimension_numbers = #tpu.dot_dimension_numbers<[1], [0], [0], [1], [0, 0, 1, 1], [], []>} : vector<8x128xf32>, vector<128x128xf32>, vector<8x128xf32> -> vector<8x128xf32>
    %c1412 = arith.constant 1412 : index
    %c0_17 = arith.constant 0 : index
    %30 = vector.load %arg2[%c1412, %c0_17] : memref<1424x128xf32, #tpu.memory_space<vmem>>, vector<1x128xf32>
    %31 = vector.broadcast %30 : vector<1x128xf32> to vector<8x128xf32>
    %32 = arith.addf %29, %31 : vector<8x128xf32>
    %33 = math.tanh %32 : vector<8x128xf32>
    %c768 = arith.constant 768 : index
    %c0_18 = arith.constant 0 : index
    %34 = vector.load %arg2[%c768, %c0_18] : memref<1424x128xf32, #tpu.memory_space<vmem>>, vector<128x128xf32>
    %cst_19 = arith.constant dense<0.000000e+00> : vector<8x128xf32>
    %35 = tpu.matmul %33, %34, %cst_19 {dimension_numbers = #tpu.dot_dimension_numbers<[1], [0], [0], [1], [0, 0, 1, 1], [], []>} : vector<8x128xf32>, vector<128x128xf32>, vector<8x128xf32> -> vector<8x128xf32>
    %c1413 = arith.constant 1413 : index
    %c0_20 = arith.constant 0 : index
    %36 = vector.load %arg2[%c1413, %c0_20] : memref<1424x128xf32, #tpu.memory_space<vmem>>, vector<1x128xf32>
    %37 = vector.broadcast %36 : vector<1x128xf32> to vector<8x128xf32>
    %38 = arith.addf %35, %37 : vector<8x128xf32>
    %39 = math.tanh %38 : vector<8x128xf32>
    %c896 = arith.constant 896 : index
    %c0_21 = arith.constant 0 : index
    %40 = vector.load %arg2[%c896, %c0_21] : memref<1424x128xf32, #tpu.memory_space<vmem>>, vector<128x128xf32>
    %cst_22 = arith.constant dense<0.000000e+00> : vector<8x128xf32>
    %41 = tpu.matmul %39, %40, %cst_22 {dimension_numbers = #tpu.dot_dimension_numbers<[1], [0], [0], [1], [0, 0, 1, 1], [], []>} : vector<8x128xf32>, vector<128x128xf32>, vector<8x128xf32> -> vector<8x128xf32>
    %c1414 = arith.constant 1414 : index
    %c0_23 = arith.constant 0 : index
    %42 = vector.load %arg2[%c1414, %c0_23] : memref<1424x128xf32, #tpu.memory_space<vmem>>, vector<1x128xf32>
    %43 = vector.broadcast %42 : vector<1x128xf32> to vector<8x128xf32>
    %44 = arith.addf %41, %43 : vector<8x128xf32>
    %45 = math.tanh %44 : vector<8x128xf32>
    %c1024 = arith.constant 1024 : index
    %c0_24 = arith.constant 0 : index
    %46 = vector.load %arg2[%c1024, %c0_24] : memref<1424x128xf32, #tpu.memory_space<vmem>>, vector<128x128xf32>
    %cst_25 = arith.constant dense<0.000000e+00> : vector<8x128xf32>
    %47 = tpu.matmul %45, %46, %cst_25 {dimension_numbers = #tpu.dot_dimension_numbers<[1], [0], [0], [1], [0, 0, 1, 1], [], []>} : vector<8x128xf32>, vector<128x128xf32>, vector<8x128xf32> -> vector<8x128xf32>
    %c1415 = arith.constant 1415 : index
    %c0_26 = arith.constant 0 : index
    %48 = vector.load %arg2[%c1415, %c0_26] : memref<1424x128xf32, #tpu.memory_space<vmem>>, vector<1x128xf32>
    %49 = vector.broadcast %48 : vector<1x128xf32> to vector<8x128xf32>
    %50 = arith.addf %47, %49 : vector<8x128xf32>
    %51 = math.tanh %50 : vector<8x128xf32>
    %c1152 = arith.constant 1152 : index
    %c0_27 = arith.constant 0 : index
    %52 = vector.load %arg2[%c1152, %c0_27] : memref<1424x128xf32, #tpu.memory_space<vmem>>, vector<128x128xf32>
    %cst_28 = arith.constant dense<0.000000e+00> : vector<8x128xf32>
    %53 = tpu.matmul %51, %52, %cst_28 {dimension_numbers = #tpu.dot_dimension_numbers<[1], [0], [0], [1], [0, 0, 1, 1], [], []>} : vector<8x128xf32>, vector<128x128xf32>, vector<8x128xf32> -> vector<8x128xf32>
    %c1280 = arith.constant 1280 : index
    %c0_29 = arith.constant 0 : index
    %54 = vector.load %arg2[%c1280, %c0_29] : memref<1424x128xf32, #tpu.memory_space<vmem>>, vector<128x128xf32>
    %cst_30 = arith.constant dense<0.000000e+00> : vector<8x128xf32>
    %55 = tpu.matmul %0, %54, %cst_30 {dimension_numbers = #tpu.dot_dimension_numbers<[1], [0], [0], [1], [0, 0, 1, 1], [], []>} : vector<8x128xf32>, vector<128x128xf32>, vector<8x128xf32> -> vector<8x128xf32>
    %56 = arith.addf %53, %55 : vector<8x128xf32>
    %c1416 = arith.constant 1416 : index
    %c0_31 = arith.constant 0 : index
    %57 = vector.load %arg2[%c1416, %c0_31] : memref<1424x128xf32, #tpu.memory_space<vmem>>, vector<1x128xf32>
    %58 = vector.broadcast %57 : vector<1x128xf32> to vector<8x128xf32>
    %59 = arith.addf %56, %58 : vector<8x128xf32>
    %60 = math.tanh %59 : vector<8x128xf32>
    %c0_32 = arith.constant 0 : index
    %c0_33 = arith.constant 0 : index
    %61 = vector.load %arg3[%c0_32, %c0_33] : memref<8x128xf32, #tpu.memory_space<vmem>>, vector<8x128xf32>
    tpu.vector_store %arg3[%c0_32, %c0_33], %60 {strides = array<i32>} : memref<8x128xf32, #tpu.memory_space<vmem>>, vector<8x128xf32>,
    return
  }
  func.func @transform_0(%arg0: i32) -> (i32, i32) {
    %c0_i32 = arith.constant 0 : i32
    %c0_i32_0 = arith.constant 0 : i32
    return %arg0, %c0_i32 : i32, i32
  }
  func.func @transform_1(%arg0: i32) -> (i32, i32) {
    %c0_i32 = arith.constant 0 : i32
    %c0_i32_0 = arith.constant 0 : i32
    %c0_i32_1 = arith.constant 0 : i32
    return %c0_i32, %c0_i32_0 : i32, i32
  }
  func.func @transform_2(%arg0: i32) -> (i32, i32) {
    %c0_i32 = arith.constant 0 : i32
    %c0_i32_0 = arith.constant 0 : i32
    return %arg0, %c0_i32 : i32, i32
  }
}

</mosaic_0001>

<bundles_post_ra>
// kernel: _run.1
= control target key start
LH: loop header
LB: loop body
LE: loop exit
PB: predicated region body
PF: predicated region fallthrough
CT: control target
= control target key end

     0   :  { %7 = vsyncpa [#allocation3], 0  ;;  %s2683_s0 = inlined_call_operand.hbm [shape: f32[16,128], index: 0, kind: input, shape index: {}]   ;;  %s2684_s1 = inlined_call_operand.hbm [shape: f32[1424,128], index: 1, kind: input, shape index: {}]   ;;  %s2685_s2 = inlined_call_operand.hbm [shape: f32[16,128], index: 2, kind: output, shape index: {}]  }
   0x1   :  { %9 = vsyncpa [#allocation3 + $0x1], 0 }
   0x2   :  { %10 = vsyncpa [#allocation6], 0 }
   0x3   :  { %11 = vsyncpa [#allocation4], 0 }
   0x4   :  { %13 = vsyncpa [#allocation4 + $0x1], 0  ;;  %s2366_s9 = smov 0   ;;  %s2368_s10 = smov 0  }
   0x5   :  { %s2370_s11 = smov 0   ;;  %s2372_s12 = smov 0  }
   0x6 LB: > { %s2387_s13 = sadd.s32 4294967295, %s2341_s12   ;;  %s1272_s14 = sadd.s32 4294967294, %s2341_s12   ;;  %s2341_s12 = sphi %s2372_s12, %s2705_s12   ;;  %s2337_s11 = sphi %s2370_s11, %s2704_s11   ;;  %s2333_s10 = sphi %s2368_s10, %s2703_s10   ;;  %s2329_s9 = sphi %s2366_s9, %s2702_s9  }
   0x7   : > { %p39_p0 = scmp.ne.s32.totalorder %s2333_s10, %s2329_s9  ;;  %p2686_p1 = scmp.eq.s32.totalorder %s2387_s13, 0 }
   0x8   : > { %p90_p3 = scmp.eq.s32.totalorder %s1272_s14, 1  ;;  %p1273_p5 = scmp.ge.s32.totalorder %s2341_s12, 1 }
   0x9   : > { %p2396_p4 = por %p2686_p1, %p39_p0  ;;  %p97_p7 = scmp.lt.s32.totalorder %s2341_s12, 3 }
   0xa   : > { %p2401_p6 = por %p90_p3, %p39_p0  ;;  %s2343_s18 = smov [#allocation5]  }
   0xb   : > { %s2689_s15 = scalar_select %p2396_p4, 1, 0 }
   0xc   : > { %s2690_s16 = scalar_select %p2401_p6, 1, 0 }
   0xd   : > { %p2406_p8 = pnand %p1273_p5, %p97_p7  ;;  %s109_s19 = sshll.u32 %s2343_s18, 4  ;;  %s2410_s19 = int_to_ptr.vmem [resolvable:$true] %s109_s19 }
   0xe   : > { %s2422_s21 = sadd.s32 1, %s2341_s12   ;;  %s26_s22 = sadd.s32 1, %s2337_s11 }
   0xf   : > { %s2691_s17 = scalar_select %p2406_p8, 1, 0 }
  0x10   : > { %p2139_p9 = pneg %p2406_p8  ;;  %s23_s23 = ssub.s32 %s2341_s12, %s2422_s21 }
  0x11   : > { %s2213_s26 = scalar_lea.hbm %s2684_s1, 22784 }
  0x12   : > { %p2417_p11 = pnand %p2139_p9, %p2686_p1  ;;  %p2214_p12 = scmp.ne.s32.totalorder %s2684_s1, %s2213_s26 }
  0x13   : > { %p2220_p5 = scmp.lt.u32.totalorder %s2213_s26, %s2684_s1 }
  0x14   : > { %p2215_p13 = pneg %p2417_p11 }
  0x16   : > { %p2216_p0 = pnand %p2215_p13, %p2214_p12 }
  0x18   : > { %p2217_p3 = pneg %p2216_p0 }
  0x1a   : > { %p2222_p7 = pnand %p2220_p5, %p2217_p3 }
  0x1c   : > { %2225 = shalt.err (!%p2222_p7)
}
  0x1d   : > { %s2226_s3 = scalar_lea.vmem %s2410_s19, 22784  ;;  %p2234_p2 = scmp.lt.s32.totalorder %s2410_s19, %s2410_s19 }
  0x1e   : > { %p2227_p9 = scmp.ne.s32.totalorder %s2410_s19, %s2226_s3  ;;  %p2235_p6 = scmp.lt.s32.totalorder %s2226_s3, %s2226_s3 }
  0x20   : > { %p2229_p10 = pnand %p2227_p9, %p2215_p13  ;;  %p2236_p4 = por %p2235_p6, %p2234_p2 }
  0x22   : > { %p2230_p1 = pneg %p2229_p10 }
  0x24   : > { %p2237_p8 = pnand %p2236_p4, %p2230_p1 }
  0x26   : > { %2240 = shalt.err (!%p2237_p8)
}
  0x27   : > { %s2344_s4 = smov 128   ;;  %s2345_s5 = smov 8  }
  0x28   : > { %2142 = dma.hbm_to_vmem [thread:$0]  (!%p2417_p11), %s2684_s1, 22784, %s2410_s19, [#allocation6], %s2344_s4, %s2344_s4, %s2345_s5  }
  0x29   : > { %p24_p2 = scmp.eq.s32.totalorder %s23_s23, 0  ;;  %p33_p1 = scmp.ne.s32.totalorder %s2337_s11, %s2333_s10 }
  0x2a   : > { %p34_p4 = scmp.eq.s32.totalorder %s2341_s12, 0  ;;  %p2152_p6 = scmp.lt.s32.totalorder %s2341_s12, 2 }
  0x2b   : > { %s2453_s8 = scalar_select %p24_p2, %s2337_s11, %s26_s22  }
  0x2c   : > { %p35_p8 = por %p34_p4, %p33_p1  ;;  %p2693_p10 = scmp.eq.s32.totalorder %s2387_s13, 1 }
  0x2d   : > { %s123_s18 = sand.u32 1, %s2337_s11   ;;  %s1277_s24 = sshll.u32 %s2341_s12, 7 }
  0x2e   : > { %p2457_p12 = por %p2693_p10, %p33_p1  ;;  %s1276_s25 = sshll.u32 %s123_s18, 3 }
  0x2f   : > { %s2466_s27 = scalar_lea.hbm %s2683_s0, %s1277_s24  ;;  %s127_s19 = scalar_lea.vmem [#allocation2], %s1276_s25 }
  0x30   : > { %s134_s22 = sshll.u32 %s127_s19, 4  ;;  %p2468_p11 = pnand %p2152_p6, %p35_p8  ;;  %s2472_s22 = int_to_ptr.vmem [resolvable:$true] %s134_s22 }
  0x31   : > { %s124_s28 = scalar_lea.sflag [#allocation3], %s123_s18  ;;  %s2241_s29 = scalar_lea.hbm %s2466_s27, 128 }
  0x32   : > { %p2242_p13 = scmp.ne.s32.totalorder %s2466_s27, %s2241_s29  ;;  %p2243_p0 = pneg %p2468_p11 }
  0x33   : > { %s2246_s4 = scalar_lea.hbm %s2683_s0, 256  ;;  %p2247_p7 = scmp.lt.u32.totalorder %s2466_s27, %s2683_s0 }
  0x34   : > { %p2244_p3 = pnand %p2243_p0, %p2242_p13  ;;  %p2248_p9 = scmp.lt.u32.totalorder %s2246_s4, %s2241_s29 }
  0x35   : > { %p2250_p1 = scmp.lt.u32.totalorder %s2241_s29, %s2466_s27 }
  0x36   : > { %p2245_p5 = pneg %p2244_p3  ;;  %p2249_p2 = por %p2248_p9, %p2247_p7 }
  0x38   : > { %p2251_p4 = por %p2250_p1, %p2249_p2 }
  0x3a   : > { %p2252_p6 = pnand %p2251_p4, %p2245_p5 }
  0x3c   : > { %2255 = shalt.err (!%p2252_p6)
}
  0x3d   : > { %s2256_s7 = scalar_lea.vmem %s2472_s22, 128  ;;  %s2346_s18 = smov [#allocation2]  }
  0x3e   : > { %p2257_p8 = scmp.ne.s32.totalorder %s2472_s22, %s2256_s7  ;;  %s2261_s24 = sshll.u32 %s2346_s18, 4  ;;  %s2262_s24 = int_to_ptr.vmem [resolvable:$false] %s2261_s24 }
  0x3f   : > { %s2263_s25 = scalar_lea.vmem %s2262_s24, 256  ;;  %p2264_p3 = scmp.lt.s32.totalorder %s2472_s22, %s2262_s24 }
  0x40   : > { %p2259_p10 = pnand %p2257_p8, %p2243_p0  ;;  %p2265_p7 = scmp.lt.s32.totalorder %s2263_s25, %s2256_s7 }
  0x42   : > { %p2260_p13 = pneg %p2259_p10  ;;  %p2266_p9 = por %p2265_p7, %p2264_p3 }
  0x44   : > { %p2267_p2 = pnand %p2266_p9, %p2260_p13 }
  0x46   : > { %2270 = shalt.err (!%p2267_p2)
}
  0x47   : > { %2146 = dma.hbm_to_vmem [thread:$0]  (!%p2468_p11), %s2466_s27, 128, %s2472_s22, %s124_s28  }
  0x48   : > { %p2696_p5 = scmp.ne.s32.totalorder %s2691_s17, 0 }
  0x49   : > { %s2502_s20 = sand.u32 (!%p2696_p5), 1, %s2333_s10   ;;  %p2697_p0 = scmp.ne.s32.totalorder (!%p2696_p5), %s2689_s15, 0 }
  0x4a   : > { %143 = sbr.rel (%p2696_p5) target bundleno = 2383 (0x94f), region = 28  ;;  %s1279_s26 = sshll.u32 (!%p2696_p5), %s2502_s20, 3 }
  0x4b   : > { %s146_s19 = scalar_lea.sflag (!%p2696_p5), [#allocation3], %s2502_s20  ;;  %s2508_s29 = scalar_lea.vmem (!%p2696_p5), [#allocation2], %s1279_s26 }
  0x51   : > { %2316 = dma.done.wait (%p2697_p0), %s146_s19, 128  }
  0x52   : > { %2318 = vsyncadd (%p2697_p0), %s146_s19, 4294967168  ;;  %p2698_p11 = scmp.eq.s32.totalorder %s2387_s13, 0 }
  0x54   : > { %2320 = dma.done.wait (%p2698_p11), [#allocation6], 22784   ;;  %p2699_p1 = pmov %p2698_p11 }
  0x55   : > { %v2347_v0 = vmov 0.0|0.0   ;;  %vm2348_vm0 = vmmov 0   ;;  %v2349_v1 = vmov 0.0   ;;  %v175_v2 = vld [vmem:[#allocation5] sm:$0xff]  ;;  %v176_v3 = vld [vmem:[#allocation5 + $0x8] sm:$0xff]  ;;  %v177_v4 = vld [vmem:[#allocation5 + $0x10] sm:$0xff] }
  0x56   : > { %2322 = vsyncadd (%p2699_p1), [#allocation6], 4294944512  ;;  %1867 = vmatprep.subr.bf16.mxu0 %v2347_v0  ;;  %1514 = vmatprep.mubr.msk.f32.mxu0 %vm2348_vm0, %v2349_v1  ;;  %v1868_v5 = vpack.c.bf16 %v176_v3, %v175_v2  ;;  %v178_v6 = vld [vmem:[#allocation5 + $0x18] sm:$0xff]  ;;  %v179_v8 = vld [vmem:[#allocation5 + $0x20] sm:$0xff]  ;;  %s1292_s15 = sshll.u32 %s2387_s13, 7  ;;  %s173_s17 = scalar_lea.vmem [#allocation7], %s1279_s26 }
  0x57   : > { %1891 = vmatprep.subr.bf16.mxu1 %v2347_v0  ;;  %1549 = vmatprep.mubr.msk.f32.mxu1 %vm2348_vm0, %v2349_v1  ;;  %v1871_v7 = vpack.c.bf16 %v178_v6, %v177_v4  ;;  %v180_v9 = vld [vmem:[#allocation5 + $0x28] sm:$0xff]  ;;  %v262_v10 = vld [vmem:[#allocation5 + $0x80] sm:$0xff]  ;;  %v264_v12 = vld [vmem:[#allocation5 + $0x90] sm:$0xff]  ;;  %s1192_s27 = sshll.u32 %s173_s17, 4  ;;  %s2639_s28 = scalar_lea.hbm %s2685_s2, %s1292_s15  ;;  %s2641_s27 = int_to_ptr.vmem [resolvable:$true] %s1192_s27 }
  0x58   : > { %1869 = vmatpush3.bf16.msra.mxu0 %v1868_v5  ;;  %v263_v11 = vld [vmem:[#allocation5 + $0x88] sm:$0xff]  ;;  %v265_v13 = vld [vmem:[#allocation5 + $0x98] sm:$0xff]  ;;  %v1874_v14 = vpack.c.bf16 %v180_v9, %v179_v8  ;;  %v181_v16 = vld [vmem:[#allocation5 + $0x30] sm:$0xff]  ;;  %s1179_s30 = scalar_lea.sflag [#allocation4], %s2502_s20  ;;  %s2271_s3 = scalar_lea.vmem %s2641_s27, 128 }
  0x59   : > { %1870 = vmatprep.subr.bf16.mxu0 %v2347_v0  ;;  %v1892_v15 = vpack.c.bf16 %v263_v11, %v262_v10  ;;  %v182_v17 = vld [vmem:[#allocation5 + $0x38] sm:$0xff]  ;;  %v1895_v18 = vpack.c.bf16 %v265_v13, %v264_v12  ;;  %v266_v19 = vld [vmem:[#allocation5 + $0xa0] sm:$0xff]  ;;  %v267_v20 = vld [vmem:[#allocation5 + $0xa8] sm:$0xff]  ;;  %p2272_p4 = scmp.ne.s32.totalorder %s2641_s27, %s2271_s3  ;;  %s2350_s13 = smov [#allocation7]  }
  0x5a   : > { %v1877_v21 = vpack.c.bf16 %v182_v17, %v181_v16  ;;  %v183_v22 = vld [vmem:[#allocation5 + $0x40] sm:$0xff]  ;;  %v184_v23 = vld [vmem:[#allocation5 + $0x48] sm:$0xff]  ;;  %v1898_v24 = vpack.c.bf16 %v267_v20, %v266_v19  ;;  %v268_v25 = vld [vmem:[#allocation5 + $0xb0] sm:$0xff]  ;;  %s2275_s4 = sshll.u32 %s2350_s13, 4  ;;  %s2276_s4 = int_to_ptr.vmem [resolvable:$false] %s2275_s4 }
  0x5b   : > { %1893 = vmatpush3.bf16.msra.mxu1 %v1892_v15  ;;  %v269_v26 = vld [vmem:[#allocation5 + $0xb8] sm:$0xff]  ;;  %v1880_v27 = vpack.c.bf16 %v184_v23, %v183_v22  ;;  %v185_v28 = vld [vmem:[#allocation5 + $0x50] sm:$0xff]  ;;  %v270_v31 = vld [vmem:[#allocation5 + $0xc0] sm:$0xff]  ;;  %p2273_p6 = pnand %p2272_p4, %p2457_p12  ;;  %s2277_s5 = scalar_lea.vmem %s2276_s4, 256 }
  0x5c   : > { %1872 = vmatpush3.bf16.msra.mxu0 %v1871_v7  ;;  %1894 = vmatprep.subr.bf16.mxu1 %v2347_v0  ;;  %v186_v29 = vld [vmem:[#allocation5 + $0x58] sm:$0xff]  ;;  %v1901_v30 = vpack.c.bf16 %v269_v26, %v268_v25  ;;  %v271_v32 = vld [vmem:[#allocation5 + $0xc8] sm:$0xff]  ;;  %v187_v34 = vld [vmem:[#allocation5 + $0x60] sm:$0xff]  ;;  %p2278_p10 = scmp.lt.s32.totalorder %s2641_s27, %s2276_s4  ;;  %p2279_p13 = scmp.lt.s32.totalorder %s2277_s5, %s2271_s3 }
  0x5d   : > { %1873 = vmatprep.subr.bf16.mxu0 %v2347_v0  ;;  %v1883_v33 = vpack.c.bf16 %v186_v29, %v185_v28  ;;  %v188_v35 = vld [vmem:[#allocation5 + $0x68] sm:$0xff]  ;;  %v1904_v36 = vpack.c.bf16 %v271_v32, %v270_v31  ;;  %v189_v38 = vld [vmem:[#allocation5 + $0x70] sm:$0xff]  ;;  %v190_v39 = vld [vmem:[#allocation5 + $0x78] sm:$0xff]  ;;  %p2274_p8 = pneg %p2273_p6 }
  0x5e   : > { %v1886_v37 = vpack.c.bf16 %v188_v35, %v187_v34  ;;  %v1889_v40 = vpack.c.bf16 %v190_v39, %v189_v38  ;;  %v2537_v41 = vld [vmem:[%s2508_s29] sm:$0xff]  ;;  %v274_v45 = vld [vmem:[#allocation5 + $0xe0] sm:$0xff]  ;;  %v275_v46 = vld [vmem:[#allocation5 + $0xe8] sm:$0xff]  ;;  %p2280_p3 = por %p2279_p13, %p2278_p10 }
  0x5f   : > { %1896 = vmatpush3.bf16.msra.mxu1 %v1895_v18  ;;  %v272_v42 = vld [vmem:[#allocation5 + $0xd0] sm:$0xff]  ;;  %v273_v43 = vld [vmem:[#allocation5 + $0xd8] sm:$0xff]  ;;  %v1910_v47 = vpack.c.bf16 %v275_v46, %v274_v45  ;;  %v354_v51 = vld [vmem:[#allocation5 + $0x100] sm:$0xff] }
  0x60   : > { %1875 = vmatpush3.bf16.msra.mxu0 %v1874_v14  ;;  %1897 = vmatprep.subr.bf16.mxu1 %v2347_v0  ;;  %v1907_v44 = vpack.c.bf16 %v273_v43, %v272_v42  ;;  %v276_v48 = vld [vmem:[#allocation5 + $0xf0] sm:$0xff]  ;;  %v277_v49 = vld [vmem:[#allocation5 + $0xf8] sm:$0xff]  ;;  %v355_v52 = vld [vmem:[#allocation5 + $0x108] sm:$0xff]  ;;  %p2281_p7 = pnand %p2280_p3, %p2274_p8 }
  0x61   : > { %1876 = vmatprep.subr.bf16.mxu0 %v2347_v0  ;;  %v1913_v50 = vpack.c.bf16 %v277_v49, %v276_v48  ;;  %v356_v53 = vld [vmem:[#allocation5 + $0x110] sm:$0xff]  ;;  %v1916_v54 = vpack.c.bf16 %v355_v52, %v354_v51  ;;  %v357_v55 = vld [vmem:[#allocation5 + $0x118] sm:$0xff]  ;;  %v358_v57 = vld [vmem:[#allocation5 + $0x120] sm:$0xff] }
  0x62   : > { %v1919_v56 = vpack.c.bf16 %v357_v55, %v356_v53  ;;  %v359_v58 = vld [vmem:[#allocation5 + $0x128] sm:$0xff]  ;;  %v360_v60 = vld [vmem:[#allocation5 + $0x130] sm:$0xff]  ;;  %v361_v61 = vld [vmem:[#allocation5 + $0x138] sm:$0xff] }
  0x63   : > { %1899 = vmatpush3.bf16.msra.mxu1 %v1898_v24  ;;  %v1922_v59 = vpack.c.bf16 %v359_v58, %v358_v57  ;;  %v1925_v62 = vpack.c.bf16 %v361_v61, %v360_v60  ;;  %v362_v63 = vld [vmem:[#allocation5 + $0x140] sm:$0xff]  ;;  %v363_v2 = vld [vmem:[#allocation5 + $0x148] sm:$0xff]  ;;  %v364_v7 = vld [vmem:[#allocation5 + $0x150] sm:$0xff] }
  0x64   : > { %1878 = vmatpush3.bf16.msra.mxu0 %v1877_v21  ;;  %1900 = vmatprep.subr.bf16.mxu1 %v2347_v0  ;;  %v1928_v3 = vpack.c.bf16 %v363_v2, %v362_v63  ;;  %v365_v8 = vld [vmem:[#allocation5 + $0x158] sm:$0xff]  ;;  %v366_v10 = vld [vmem:[#allocation5 + $0x160] sm:$0xff]  ;;  %v367_v11 = vld [vmem:[#allocation5 + $0x168] sm:$0xff] }
  0x65   : > { %1879 = vmatprep.subr.bf16.mxu0 %v2347_v0  ;;  %v1931_v9 = vpack.c.bf16 %v365_v8, %v364_v7  ;;  %v1934_v12 = vpack.c.bf16 %v367_v11, %v366_v10  ;;  %v368_v13 = vld [vmem:[#allocation5 + $0x170] sm:$0xff]  ;;  %v369_v14 = vld [vmem:[#allocation5 + $0x178] sm:$0xff]  ;;  %v446_v16 = vld [vmem:[#allocation5 + $0x180] sm:$0xff] }
  0x66   : > { %v1937_v15 = vpack.c.bf16 %v369_v14, %v368_v13  ;;  %v447_v17 = vld [vmem:[#allocation5 + $0x188] sm:$0xff]  ;;  %v448_v18 = vld [vmem:[#allocation5 + $0x190] sm:$0xff]  ;;  %v449_v20 = vld [vmem:[#allocation5 + $0x198] sm:$0xff] }
  0x67   : > { %1902 = vmatpush3.bf16.msra.mxu1 %v1901_v30  ;;  %v1940_v19 = vpack.c.bf16 %v447_v17, %v446_v16  ;;  %v1943_v21 = vpack.c.bf16 %v449_v20, %v448_v18  ;;  %v450_v22 = vld [vmem:[#allocation5 + $0x1a0] sm:$0xff]  ;;  %v451_v23 = vld [vmem:[#allocation5 + $0x1a8] sm:$0xff]  ;;  %v452_v25 = vld [vmem:[#allocation5 + $0x1b0] sm:$0xff] }
  0x68   : > { %1881 = vmatpush3.bf16.msra.mxu0 %v1880_v27  ;;  %1903 = vmatprep.subr.bf16.mxu1 %v2347_v0  ;;  %v1946_v24 = vpack.c.bf16 %v451_v23, %v450_v22  ;;  %v453_v26 = vld [vmem:[#allocation5 + $0x1b8] sm:$0xff]  ;;  %v454_v28 = vld [vmem:[#allocation5 + $0x1c0] sm:$0xff]  ;;  %v455_v29 = vld [vmem:[#allocation5 + $0x1c8] sm:$0xff] }
  0x69   : > { %1882 = vmatprep.subr.bf16.mxu0 %v2347_v0  ;;  %v1949_v27 = vpack.c.bf16 %v453_v26, %v452_v25  ;;  %v1952_v30 = vpack.c.bf16 %v455_v29, %v454_v28  ;;  %v1282_v31 = vld [vmem:[#allocation5 + $0x580] ss:$0 sm:$0xff]  ;;  %v460_v43 = vld [vmem:[#allocation5 + $0x1f0] sm:$0xff]  ;;  %v543_v53 = vld [vmem:[#allocation5 + $0x228] sm:$0xff] }
  0x6a   : > { %v458_v39 = vld [vmem:[#allocation5 + $0x1e0] sm:$0xff]  ;;  %v540_v48 = vld [vmem:[#allocation5 + $0x210] sm:$0xff]  ;;  %v551_v8 = vld [vmem:[#allocation5 + $0x268] sm:$0xff] }
  0x6b   : > { %1905 = vmatpush3.bf16.msra.mxu1 %v1904_v36  ;;  %v456_v36 = vld [vmem:[#allocation5 + $0x1d0] sm:$0xff]  ;;  %v538_v46 = vld [vmem:[#allocation5 + $0x200] sm:$0xff]  ;;  %v553_v11 = vld [vmem:[#allocation5 + $0x278] sm:$0xff] }
  0x6c   : > { %1884 = vmatpush3.bf16.msra.mxu0 %v1883_v33  ;;  %1906 = vmatprep.subr.bf16.mxu1 %v2347_v0  ;;  %v542_v52 = vld [vmem:[#allocation5 + $0x220] sm:$0xff]  ;;  %v544_v55 = vld [vmem:[#allocation5 + $0x230] sm:$0xff]  ;;  %v631_v14 = vld [vmem:[#allocation5 + $0x288] sm:$0xff] }
  0x6d   : > { %1885 = vmatprep.subr.bf16.mxu0 %v2347_v0  ;;  %v546_v58 = vld [vmem:[#allocation5 + $0x240] sm:$0xff]  ;;  %v552_v10 = vld [vmem:[#allocation5 + $0x270] sm:$0xff]  ;;  %v633_v17 = vld [vmem:[#allocation5 + $0x298] sm:$0xff] }
  0x6e   : > { %v1283_v61 = vld [vmem:[#allocation5 + $0x581] ss:$0 sm:$0xff]  ;;  %v635_v20 = vld [vmem:[#allocation5 + $0x2a8] sm:$0xff]  ;;  %v636_v22 = vld [vmem:[#allocation5 + $0x2b0] sm:$0xff] }
  0x6f   : > { %1908 = vmatpush3.bf16.msra.mxu1 %v1907_v44  ;;  %v461_v44 = vld [vmem:[#allocation5 + $0x1f8] sm:$0xff]  ;;  %v550_v7 = vld [vmem:[#allocation5 + $0x260] sm:$0xff]  ;;  %v639_v26 = vld [vmem:[#allocation5 + $0x2c8] sm:$0xff] }
  0x70   : > { %1887 = vmatpush3.bf16.msra.mxu0 %v1886_v37  ;;  %1909 = vmatprep.subr.bf16.mxu1 %v2347_v0  ;;  %v457_v37 = vld [vmem:[#allocation5 + $0x1d8] sm:$0xff]  ;;  %v1961_v45 = vpack.c.bf16 %v461_v44, %v460_v43  ;;  %v630_v13 = vld [vmem:[#allocation5 + $0x280] sm:$0xff]  ;;  %v723_v44 = vld [vmem:[#allocation5 + $0x308] sm:$0xff] }
  0x71   : > { %1888 = vmatprep.subr.bf16.mxu0 %v2347_v0  ;;  %v1955_v38 = vpack.c.bf16 %v457_v37, %v456_v36  ;;  %v1988_v16 = vpack.c.bf16 %v631_v14, %v630_v13  ;;  %v637_v23 = vld [vmem:[#allocation5 + $0x2b8] sm:$0xff]  ;;  %v638_v25 = vld [vmem:[#allocation5 + $0x2c0] sm:$0xff]  ;;  %v643_v37 = vld [vmem:[#allocation5 + $0x2e8] sm:$0xff] }
  0x72   : > { %v1284_v28 = vld [vmem:[#allocation5 + $0x582] ss:$0 sm:$0xff]  ;;  %v817_v14 = vld [vmem:[#allocation5 + $0x398] sm:$0xff] }
  0x73   : > { %1911 = vmatpush3.bf16.msra.mxu1 %v1910_v47  ;;  %v539_v47 = vld [vmem:[#allocation5 + $0x208] sm:$0xff]  ;;  %v642_v36 = vld [vmem:[#allocation5 + $0x2e0] sm:$0xff] }
  0x74   : > { %1890 = vmatpush3.bf16.msra.mxu0 %v1889_v40  ;;  %1912 = vmatprep.subr.bf16.mxu1 %v2347_v0  ;;  %v459_v40 = vld [vmem:[#allocation5 + $0x1e8] sm:$0xff]  ;;  %v1964_v49 = vpack.c.bf16 %v539_v47, %v538_v46  ;;  %v722_v43 = vld [vmem:[#allocation5 + $0x300] sm:$0xff]  ;;  %v725_v47 = vld [vmem:[#allocation5 + $0x318] sm:$0xff] }
  0x75   : > { %1915 = vmatprep.subr.bf16.mxu0 %v2347_v0  ;;  %v1958_v42 = vpack.c.bf16 %v459_v40, %v458_v39  ;;  %v644_v39 = vld [vmem:[#allocation5 + $0x2f0] sm:$0xff]  ;;  %v645_v40 = vld [vmem:[#allocation5 + $0x2f8] sm:$0xff]  ;;  %v2012_v46 = vpack.c.bf16 %v723_v44, %v722_v43 }
  0x76   : > { %v909_v44 = vld [vmem:[#allocation5 + $0x418] sm:$0xff] }
  0x77   : > { %1515 = vmatmul.mubr.f32.vlgmr.msra.gmra.mrb[0].mxu0 %v2537_v41  ;;  %1914 = vmatpush3.bf16.msra.mxu1 %v1913_v50  ;;  %v541_v50 = vld [vmem:[#allocation5 + $0x218] sm:$0xff] }
  0x78   : > { %1584 = vmatprep.mubr.msk.f32.mxu0 %vm2348_vm0, %v2349_v1  ;;  %1939 = vmatprep.subr.bf16.mxu1 %v2347_v0  ;;  %v1967_v51 = vpack.c.bf16 %v541_v50, %v540_v48  ;;  %v727_v50 = vld [vmem:[#allocation5 + $0x328] sm:$0xff] }
  0x79   : > { %1917 = vmatpush3.bf16.msra.mxu0 %v1916_v54  ;;  %v1970_v54 = vpack.c.bf16 %v543_v53, %v542_v52  ;;  %v728_v52 = vld [vmem:[#allocation5 + $0x330] sm:$0xff]  ;;  %v729_v53 = vld [vmem:[#allocation5 + $0x338] sm:$0xff] }
  0x7a   : > { %1918 = vmatprep.subr.bf16.mxu0 %v2347_v0 }
  0x7d   : > { %1920 = vmatpush3.bf16.msra.mxu0 %v1919_v56  ;;  %v545_v56 = vld [vmem:[#allocation5 + $0x238] sm:$0xff] }
  0x7e   : > { %1921 = vmatprep.subr.bf16.mxu0 %v2347_v0  ;;  %v1973_v57 = vpack.c.bf16 %v545_v56, %v544_v55  ;;  %v730_v55 = vld [vmem:[#allocation5 + $0x340] sm:$0xff]  ;;  %v731_v56 = vld [vmem:[#allocation5 + $0x348] sm:$0xff] }
  0x81   : > { %1923 = vmatpush3.bf16.msra.mxu0 %v1922_v59  ;;  %v547_v59 = vld [vmem:[#allocation5 + $0x248] sm:$0xff] }
  0x82   : > { %1924 = vmatprep.subr.bf16.mxu0 %v2347_v0  ;;  %v1976_v60 = vpack.c.bf16 %v547_v59, %v546_v58  ;;  %v1285_v58 = vld [vmem:[#allocation5 + $0x583] ss:$0 sm:$0xff] }
  0x85   : > { %1926 = vmatpush3.bf16.msra.mxu0 %v1925_v62 }
  0x86   : > { %1927 = vmatprep.subr.bf16.mxu0 %v2347_v0 }
  0x89   : > { %1929 = vmatpush3.bf16.msra.mxu0 %v1928_v3 }
  0x8a   : > { %1930 = vmatprep.subr.bf16.mxu0 %v2347_v0 }
  0x8d   : > { %1932 = vmatpush3.bf16.msra.mxu0 %v1931_v9  ;;  %v1982_v9 = vpack.c.bf16 %v551_v8, %v550_v7  ;;  %v736_v7 = vld [vmem:[#allocation5 + $0x370] sm:$0xff]  ;;  %v737_v8 = vld [vmem:[#allocation5 + $0x378] sm:$0xff] }
  0x8e   : > { %1933 = vmatprep.subr.bf16.mxu0 %v2347_v0 }
  0x91   : > { %1935 = vmatpush3.bf16.msra.mxu0 %v1934_v12  ;;  %v1985_v12 = vpack.c.bf16 %v553_v11, %v552_v10  ;;  %v814_v10 = vld [vmem:[#allocation5 + $0x380] sm:$0xff]  ;;  %v815_v11 = vld [vmem:[#allocation5 + $0x388] sm:$0xff] }
  0x92   : > { %1936 = vmatprep.subr.bf16.mxu0 %v2347_v0  ;;  %v2036_v13 = vpack.c.bf16 %v815_v11, %v814_v10  ;;  %v1016_v10 = vld [vmem:[#allocation5 + $0x510] sm:$0xff]  ;;  %v1017_v11 = vld [vmem:[#allocation5 + $0x518] sm:$0xff] }
  0x95   : > { %1938 = vmatpush3.bf16.msra.mxu0 %v1937_v15  ;;  %v632_v15 = vld [vmem:[#allocation5 + $0x290] sm:$0xff] }
  0x96   : > { %1963 = vmatprep.subr.bf16.mxu0 %v2347_v0  ;;  %v1991_v18 = vpack.c.bf16 %v633_v17, %v632_v15  ;;  %v819_v17 = vld [vmem:[#allocation5 + $0x3a8] sm:$0xff] }
 0x14a   : > { %v257_v4 = vpop.f32.mrb[0].mxu0 }
 0x14b   : > { %2193 = vtanh.f32 %v257_v4  ;;  %v1516_v5 = vpop.f32.mrb[1].mxu0  ;;  %v548_v4 = vld [vmem:[#allocation5 + $0x250] sm:$0xff] }
 0x14c   : > { %v549_v5 = vld [vmem:[#allocation5 + $0x258] sm:$0xff] }
 0x155   : > { %v2194_v6 = vpop.eup %2193 }
 0x156   : > { %1550 = vmatmul.mubr.f32.vlgmr.msra.gmra.mrb[0].mxu1 %v2194_v6  ;;  %v1979_v6 = vpack.c.bf16 %v549_v5, %v548_v4  ;;  %v734_v4 = vld [vmem:[#allocation5 + $0x360] sm:$0xff]  ;;  %v735_v5 = vld [vmem:[#allocation5 + $0x368] sm:$0xff] }
 0x157   : > { %1619 = vmatprep.mubr.msk.f32.mxu1 %vm2348_vm0, %v2349_v1  ;;  %1941 = vmatpush3.bf16.msra.mxu1 %v1940_v19  ;;  %v634_v19 = vld [vmem:[#allocation5 + $0x2a0] sm:$0xff] }
 0x158   : > { %1942 = vmatprep.subr.bf16.mxu1 %v2347_v0 }
 0x15b   : > { %1944 = vmatpush3.bf16.msra.mxu1 %v1943_v21  ;;  %v1994_v21 = vpack.c.bf16 %v635_v20, %v634_v19  ;;  %v820_v19 = vld [vmem:[#allocation5 + $0x3b0] sm:$0xff]  ;;  %v821_v20 = vld [vmem:[#allocation5 + $0x3b8] sm:$0xff] }
 0x15c   : > { %1945 = vmatprep.subr.bf16.mxu1 %v2347_v0 }
 0x15f   : > { %1947 = vmatpush3.bf16.msra.mxu1 %v1946_v24  ;;  %v1997_v24 = vpack.c.bf16 %v637_v23, %v636_v22  ;;  %v822_v22 = vld [vmem:[#allocation5 + $0x3c0] sm:$0xff]  ;;  %v823_v23 = vld [vmem:[#allocation5 + $0x3c8] sm:$0xff] }
 0x160   : > { %1948 = vmatprep.subr.bf16.mxu1 %v2347_v0 }
 0x163   : > { %1950 = vmatpush3.bf16.msra.mxu1 %v1949_v27  ;;  %v2000_v27 = vpack.c.bf16 %v639_v26, %v638_v25  ;;  %v1286_v25 = vld [vmem:[#allocation5 + $0x584] ss:$0 sm:$0xff] }
 0x164   : > { %1951 = vmatprep.subr.bf16.mxu1 %v2347_v0 }
 0x167   : > { %1953 = vmatpush3.bf16.msra.mxu1 %v1952_v30 }
 0x168   : > { %1954 = vmatprep.subr.bf16.mxu1 %v2347_v0 }
 0x16b   : > { %1956 = vmatpush3.bf16.msra.mxu1 %v1955_v38  ;;  %v2006_v38 = vpack.c.bf16 %v643_v37, %v642_v36  ;;  %v828_v36 = vld [vmem:[#allocation5 + $0x3f0] sm:$0xff]  ;;  %v829_v37 = vld [vmem:[#allocation5 + $0x3f8] sm:$0xff] }
 0x16c   : > { %1957 = vmatprep.subr.bf16.mxu1 %v2347_v0 }
 0x16f   : > { %1959 = vmatpush3.bf16.msra.mxu1 %v1958_v42  ;;  %v2009_v42 = vpack.c.bf16 %v645_v40, %v644_v39  ;;  %v906_v39 = vld [vmem:[#allocation5 + $0x400] sm:$0xff]  ;;  %v907_v40 = vld [vmem:[#allocation5 + $0x408] sm:$0xff] }
 0x170   : > { %1960 = vmatprep.subr.bf16.mxu1 %v2347_v0  ;;  %v2060_v43 = vpack.c.bf16 %v907_v40, %v906_v39  ;;  %v1006_v39 = vld [vmem:[#allocation5 + $0x4c0] sm:$0xff]  ;;  %v1007_v40 = vld [vmem:[#allocation5 + $0x4c8] sm:$0xff] }
 0x173   : > { %1962 = vmatpush3.bf16.msra.mxu1 %v1961_v45  ;;  %v724_v45 = vld [vmem:[#allocation5 + $0x310] sm:$0xff] }
 0x174   : > { %1987 = vmatprep.subr.bf16.mxu1 %v2347_v0  ;;  %v2015_v48 = vpack.c.bf16 %v725_v47, %v724_v45  ;;  %v911_v47 = vld [vmem:[#allocation5 + $0x428] sm:$0xff] }
 0x229   : > { %v349_v32 = vpop.f32.mrb[0].mxu1 }
 0x22a   : > { %v350_v33 = vadd.f32 %v1282_v31, %v349_v32  ;;  %v1551_v34 = vpop.f32.mrb[1].mxu1 }
 0x22b   : > { %v641_v34 = vld [vmem:[#allocation5 + $0x2d8] sm:$0xff] }
 0x22c   : > { %2195 = vtanh.f32 %v350_v33  ;;  %v640_v33 = vld [vmem:[#allocation5 + $0x2d0] sm:$0xff] }
 0x236   : > { %v2196_v35 = vpop.eup %2195 }
 0x237   : > { %1585 = vmatmul.mubr.f32.vlgmr.msra.gmra.mrb[2].mxu0 %v2196_v35  ;;  %v2003_v35 = vpack.c.bf16 %v641_v34, %v640_v33  ;;  %v826_v33 = vld [vmem:[#allocation5 + $0x3e0] sm:$0xff]  ;;  %v827_v34 = vld [vmem:[#allocation5 + $0x3e8] sm:$0xff] }
 0x238   : > { %1654 = vmatprep.mubr.msk.f32.mxu0 %vm2348_vm0, %v2349_v1  ;;  %1965 = vmatpush3.bf16.msra.mxu0 %v1964_v49  ;;  %v726_v49 = vld [vmem:[#allocation5 + $0x320] sm:$0xff] }
 0x239   : > { %1966 = vmatprep.subr.bf16.mxu0 %v2347_v0 }
 0x23c   : > { %1968 = vmatpush3.bf16.msra.mxu0 %v1967_v51  ;;  %v2018_v51 = vpack.c.bf16 %v727_v50, %v726_v49  ;;  %v912_v49 = vld [vmem:[#allocation5 + $0x430] sm:$0xff]  ;;  %v913_v50 = vld [vmem:[#allocation5 + $0x438] sm:$0xff] }
 0x23d   : > { %1969 = vmatprep.subr.bf16.mxu0 %v2347_v0 }
 0x240   : > { %1971 = vmatpush3.bf16.msra.mxu0 %v1970_v54  ;;  %v2021_v54 = vpack.c.bf16 %v729_v53, %v728_v52  ;;  %v914_v52 = vld [vmem:[#allocation5 + $0x440] sm:$0xff]  ;;  %v915_v53 = vld [vmem:[#allocation5 + $0x448] sm:$0xff] }
 0x241   : > { %1972 = vmatprep.subr.bf16.mxu0 %v2347_v0 }
 0x244   : > { %1974 = vmatpush3.bf16.msra.mxu0 %v1973_v57  ;;  %v2024_v57 = vpack.c.bf16 %v731_v56, %v730_v55  ;;  %v1287_v55 = vld [vmem:[#allocation5 + $0x585] ss:$0 sm:$0xff] }
 0x245   : > { %1975 = vmatprep.subr.bf16.mxu0 %v2347_v0 }
 0x248   : > { %1977 = vmatpush3.bf16.msra.mxu0 %v1976_v60 }
 0x249   : > { %1978 = vmatprep.subr.bf16.mxu0 %v2347_v0 }
 0x24c   : > { %1980 = vmatpush3.bf16.msra.mxu0 %v1979_v6  ;;  %v2030_v6 = vpack.c.bf16 %v735_v5, %v734_v4  ;;  %v920_v4 = vld [vmem:[#allocation5 + $0x470] sm:$0xff]  ;;  %v921_v5 = vld [vmem:[#allocation5 + $0x478] sm:$0xff] }
 0x24d   : > { %1981 = vmatprep.subr.bf16.mxu0 %v2347_v0 }
 0x250   : > { %1983 = vmatpush3.bf16.msra.mxu0 %v1982_v9  ;;  %v2033_v9 = vpack.c.bf16 %v737_v8, %v736_v7  ;;  %v1014_v7 = vld [vmem:[#allocation5 + $0x500] sm:$0xff]  ;;  %v1015_v8 = vld [vmem:[#allocation5 + $0x508] sm:$0xff] }
 0x251   : > { %1984 = vmatprep.subr.bf16.mxu0 %v2347_v0 }
 0x254   : > { %1986 = vmatpush3.bf16.msra.mxu0 %v1985_v12  ;;  %v816_v12 = vld [vmem:[#allocation5 + $0x390] sm:$0xff] }
 0x255   : > { %2011 = vmatprep.subr.bf16.mxu0 %v2347_v0  ;;  %v2039_v15 = vpack.c.bf16 %v817_v14, %v816_v12  ;;  %v2087_v12 = vpack.c.bf16 %v1017_v11, %v1016_v10  ;;  %v1019_v14 = vld [vmem:[#allocation5 + $0x528] sm:$0xff] }
 0x30a   : > { %v441_v62 = vpop.f32.mrb[2].mxu0 }
 0x30b   : > { %v442_v63 = vadd.f32 %v1283_v61, %v441_v62  ;;  %v1586_v2 = vpop.f32.mrb[3].mxu0 }
 0x30c   : > { %v733_v2 = vld [vmem:[#allocation5 + $0x358] sm:$0xff] }
 0x30d   : > { %2197 = vtanh.f32 %v442_v63  ;;  %v732_v63 = vld [vmem:[#allocation5 + $0x350] sm:$0xff] }
 0x317   : > { %v2198_v3 = vpop.eup %2197 }
 0x318   : > { %1620 = vmatmul.mubr.f32.vlgmr.msra.gmra.mrb[2].mxu1 %v2198_v3  ;;  %v2027_v3 = vpack.c.bf16 %v733_v2, %v732_v63  ;;  %v918_v63 = vld [vmem:[#allocation5 + $0x460] sm:$0xff]  ;;  %v919_v2 = vld [vmem:[#allocation5 + $0x468] sm:$0xff] }
 0x319   : > { %1689 = vmatprep.mubr.msk.f32.mxu1 %vm2348_vm0, %v2349_v1  ;;  %1989 = vmatpush3.bf16.msra.mxu1 %v1988_v16  ;;  %v818_v16 = vld [vmem:[#allocation5 + $0x3a0] sm:$0xff] }
 0x31a   : > { %1990 = vmatprep.subr.bf16.mxu1 %v2347_v0 }
 0x31d   : > { %1992 = vmatpush3.bf16.msra.mxu1 %v1991_v18  ;;  %v2042_v18 = vpack.c.bf16 %v819_v17, %v818_v16  ;;  %v1020_v16 = vld [vmem:[#allocation5 + $0x530] sm:$0xff]  ;;  %v1021_v17 = vld [vmem:[#allocation5 + $0x538] sm:$0xff] }
 0x31e   : > { %1993 = vmatprep.subr.bf16.mxu1 %v2347_v0 }
 0x321   : > { %1995 = vmatpush3.bf16.msra.mxu1 %v1994_v21  ;;  %v2045_v21 = vpack.c.bf16 %v821_v20, %v820_v19  ;;  %v1022_v19 = vld [vmem:[#allocation5 + $0x540] sm:$0xff]  ;;  %v1023_v20 = vld [vmem:[#allocation5 + $0x548] sm:$0xff] }
 0x322   : > { %1996 = vmatprep.subr.bf16.mxu1 %v2347_v0 }
 0x325   : > { %1998 = vmatpush3.bf16.msra.mxu1 %v1997_v24  ;;  %v2048_v24 = vpack.c.bf16 %v823_v23, %v822_v22  ;;  %v1288_v22 = vld [vmem:[#allocation5 + $0x586] ss:$0 sm:$0xff] }
 0x326   : > { %1999 = vmatprep.subr.bf16.mxu1 %v2347_v0 }
 0x329   : > { %2001 = vmatpush3.bf16.msra.mxu1 %v2000_v27 }
 0x32a   : > { %2002 = vmatprep.subr.bf16.mxu1 %v2347_v0 }
 0x32d   : > { %2004 = vmatpush3.bf16.msra.mxu1 %v2003_v35  ;;  %v2054_v35 = vpack.c.bf16 %v827_v34, %v826_v33  ;;  %v1002_v33 = vld [vmem:[#allocation5 + $0x4a0] sm:$0xff]  ;;  %v1003_v34 = vld [vmem:[#allocation5 + $0x4a8] sm:$0xff] }
 0x32e   : > { %2005 = vmatprep.subr.bf16.mxu1 %v2347_v0 }
 0x331   : > { %2007 = vmatpush3.bf16.msra.mxu1 %v2006_v38  ;;  %v2057_v38 = vpack.c.bf16 %v829_v37, %v828_v36  ;;  %v1004_v36 = vld [vmem:[#allocation5 + $0x4b0] sm:$0xff]  ;;  %v1005_v37 = vld [vmem:[#allocation5 + $0x4b8] sm:$0xff] }
 0x332   : > { %2008 = vmatprep.subr.bf16.mxu1 %v2347_v0 }
 0x335   : > { %2010 = vmatpush3.bf16.msra.mxu1 %v2009_v42  ;;  %v908_v42 = vld [vmem:[#allocation5 + $0x410] sm:$0xff] }
 0x336   : > { %2035 = vmatprep.subr.bf16.mxu1 %v2347_v0  ;;  %v2063_v45 = vpack.c.bf16 %v909_v44, %v908_v42  ;;  %v2120_v42 = vpack.c.bf16 %v1007_v40, %v1006_v39 }
 0x3eb   : > { %v533_v29 = vpop.f32.mrb[2].mxu1 }
 0x3ec   : > { %v534_v30 = vadd.f32 %v1284_v28, %v533_v29  ;;  %v1621_v31 = vpop.f32.mrb[3].mxu1 }
 0x3ed   : > { %v825_v31 = vld [vmem:[#allocation5 + $0x3d8] sm:$0xff] }
 0x3ee   : > { %2199 = vtanh.f32 %v534_v30  ;;  %v824_v30 = vld [vmem:[#allocation5 + $0x3d0] sm:$0xff] }
 0x3f8   : > { %v2200_v32 = vpop.eup %2199 }
 0x3f9   : > { %1655 = vmatmul.mubr.f32.vlgmr.msra.gmra.mrb[4].mxu0 %v2200_v32  ;;  %v2051_v32 = vpack.c.bf16 %v825_v31, %v824_v30  ;;  %v1001_v30 = vld [vmem:[#allocation5 + $0x498] sm:$0xff] }
 0x3fa   : > { %1724 = vmatprep.mubr.msk.f32.mxu0 %vm2348_vm0, %v2349_v1  ;;  %2013 = vmatpush3.bf16.msra.mxu0 %v2012_v46  ;;  %v910_v46 = vld [vmem:[#allocation5 + $0x420] sm:$0xff] }
 0x3fb   : > { %2014 = vmatprep.subr.bf16.mxu0 %v2347_v0 }
 0x3fe   : > { %2016 = vmatpush3.bf16.msra.mxu0 %v2015_v48  ;;  %v2066_v48 = vpack.c.bf16 %v911_v47, %v910_v46  ;;  %v1009_v46 = vld [vmem:[#allocation5 + $0x4d8] sm:$0xff] }
 0x3ff   : > { %2017 = vmatprep.subr.bf16.mxu0 %v2347_v0 }
 0x402   : > { %2019 = vmatpush3.bf16.msra.mxu0 %v2018_v51  ;;  %v2069_v51 = vpack.c.bf16 %v913_v50, %v912_v49  ;;  %v1027_v49 = vld [vmem:[#allocation5 + $0x568] sm:$0xff]  ;;  %v1010_v50 = vld [vmem:[#allocation5 + $0x4e0] sm:$0xff] }
 0x403   : > { %2020 = vmatprep.subr.bf16.mxu0 %v2347_v0 }
 0x406   : > { %2022 = vmatpush3.bf16.msra.mxu0 %v2021_v54  ;;  %v2072_v54 = vpack.c.bf16 %v915_v53, %v914_v52  ;;  %v1011_v52 = vld [vmem:[#allocation5 + $0x4e8] sm:$0xff]  ;;  %v1028_v53 = vld [vmem:[#allocation5 + $0x570] sm:$0xff] }
 0x407   : > { %2023 = vmatprep.subr.bf16.mxu0 %v2347_v0 }
 0x40a   : > { %2025 = vmatpush3.bf16.msra.mxu0 %v2024_v57 }
 0x40b   : > { %2026 = vmatprep.subr.bf16.mxu0 %v2347_v0 }
 0x40e   : > { %2028 = vmatpush3.bf16.msra.mxu0 %v2027_v3  ;;  %v2078_v3 = vpack.c.bf16 %v919_v2, %v918_v63 }
 0x40f   : > { %2029 = vmatprep.subr.bf16.mxu0 %v2347_v0 }
 0x412   : > { %2031 = vmatpush3.bf16.msra.mxu0 %v2030_v6  ;;  %v2081_v6 = vpack.c.bf16 %v921_v5, %v920_v4 }
 0x413   : > { %2032 = vmatprep.subr.bf16.mxu0 %v2347_v0 }
 0x416   : > { %2034 = vmatpush3.bf16.msra.mxu0 %v2033_v9  ;;  %v2084_v9 = vpack.c.bf16 %v1015_v8, %v1014_v7 }
 0x417   : > { %2059 = vmatprep.subr.bf16.mxu0 %v2347_v0 }
 0x4cc   : > { %v625_v59 = vpop.f32.mrb[4].mxu0 }
 0x4cd   : > { %v626_v60 = vadd.f32 %v1285_v58, %v625_v59  ;;  %v1656_v61 = vpop.f32.mrb[5].mxu0 }
 0x4ce   : > { %v917_v61 = vld [vmem:[#allocation5 + $0x458] sm:$0xff] }
 0x4cf   : > { %2201 = vtanh.f32 %v626_v60  ;;  %v916_v60 = vld [vmem:[#allocation5 + $0x450] sm:$0xff] }
 0x4d9   : > { %v2202_v62 = vpop.eup %2201 }
 0x4da   : > { %1690 = vmatmul.mubr.f32.vlgmr.msra.gmra.mrb[4].mxu1 %v2202_v62  ;;  %v2075_v62 = vpack.c.bf16 %v917_v61, %v916_v60  ;;  %v1289_v60 = vld [vmem:[#allocation5 + $0x587] ss:$0 sm:$0xff] }
 0x4db   : > { %1759 = vmatprep.mubr.msk.f32.mxu1 %vm2348_vm0, %v2349_v1  ;;  %2037 = vmatpush3.bf16.msra.mxu1 %v2036_v13  ;;  %v1018_v13 = vld [vmem:[#allocation5 + $0x520] sm:$0xff] }
 0x4dc   : > { %2038 = vmatprep.subr.bf16.mxu1 %v2347_v0 }
 0x4df   : > { %2040 = vmatpush3.bf16.msra.mxu1 %v2039_v15  ;;  %v2090_v15 = vpack.c.bf16 %v1019_v14, %v1018_v13 }
 0x4e0   : > { %2041 = vmatprep.subr.bf16.mxu1 %v2347_v0 }
 0x4e3   : > { %2043 = vmatpush3.bf16.msra.mxu1 %v2042_v18  ;;  %v2093_v18 = vpack.c.bf16 %v1021_v17, %v1020_v16 }
 0x4e4   : > { %2044 = vmatprep.subr.bf16.mxu1 %v2347_v0 }
 0x4e7   : > { %2046 = vmatpush3.bf16.msra.mxu1 %v2045_v21  ;;  %v2096_v21 = vpack.c.bf16 %v1023_v20, %v1022_v19 }
 0x4e8   : > { %2047 = vmatprep.subr.bf16.mxu1 %v2347_v0 }
 0x4eb   : > { %2049 = vmatpush3.bf16.msra.mxu1 %v2048_v24 }
 0x4ec   : > { %2050 = vmatprep.subr.bf16.mxu1 %v2347_v0 }
 0x4ef   : > { %2052 = vmatpush3.bf16.msra.mxu1 %v2051_v32 }
 0x4f0   : > { %2053 = vmatprep.subr.bf16.mxu1 %v2347_v0 }
 0x4f3   : > { %2055 = vmatpush3.bf16.msra.mxu1 %v2054_v35  ;;  %v2114_v35 = vpack.c.bf16 %v1003_v34, %v1002_v33 }
 0x4f4   : > { %2056 = vmatprep.subr.bf16.mxu1 %v2347_v0 }
 0x4f7   : > { %2058 = vmatpush3.bf16.msra.mxu1 %v2057_v38  ;;  %v2117_v38 = vpack.c.bf16 %v1005_v37, %v1004_v36 }
 0x4f8   : > { %2083 = vmatprep.subr.bf16.mxu1 %v2347_v0 }
 0x5ad   : > { %v717_v26 = vpop.f32.mrb[4].mxu1 }
 0x5ae   : > { %v718_v27 = vadd.f32 %v1286_v25, %v717_v26  ;;  %v1691_v28 = vpop.f32.mrb[5].mxu1  ;;  %v998_v26 = vld [vmem:[#allocation5 + $0x480] sm:$0xff] }
 0x5b0   : > { %2203 = vtanh.f32 %v718_v27  ;;  %v999_v27 = vld [vmem:[#allocation5 + $0x488] sm:$0xff] }
 0x5b1   : > { %v2108_v28 = vpack.c.bf16 %v999_v27, %v998_v26 }
 0x5ba   : > { %v2204_v29 = vpop.eup %2203 }
 0x5bb   : > { %1725 = vmatmul.mubr.f32.vlgmr.msra.gmra.mrb[6].mxu0 %v2204_v29  ;;  %v1000_v29 = vld [vmem:[#allocation5 + $0x490] sm:$0xff] }
 0x5bc   : > { %1794 = vmatprep.mubr.msk.f32.mxu0 %vm2348_vm0, %v2349_v1  ;;  %2061 = vmatpush3.bf16.msra.mxu0 %v2060_v43  ;;  %v2111_v32 = vpack.c.bf16 %v1001_v30, %v1000_v29  ;;  %v1025_v43 = vld [vmem:[#allocation5 + $0x558] sm:$0xff] }
 0x5bd   : > { %2062 = vmatprep.subr.bf16.mxu0 %v2347_v0 }
 0x5c0   : > { %2064 = vmatpush3.bf16.msra.mxu0 %v2063_v45  ;;  %v1008_v45 = vld [vmem:[#allocation5 + $0x4d0] sm:$0xff] }
 0x5c1   : > { %2065 = vmatprep.subr.bf16.mxu0 %v2347_v0  ;;  %v2123_v47 = vpack.c.bf16 %v1009_v46, %v1008_v45 }
 0x5c4   : > { %2067 = vmatpush3.bf16.msra.mxu0 %v2066_v48  ;;  %v1026_v48 = vld [vmem:[#allocation5 + $0x560] sm:$0xff] }
 0x5c5   : > { %2068 = vmatprep.subr.bf16.mxu0 %v2347_v0 }
 0x5c8   : > { %2070 = vmatpush3.bf16.msra.mxu0 %v2069_v51  ;;  %v2102_v51 = vpack.c.bf16 %v1027_v49, %v1026_v48 }
 0x5c9   : > { %2071 = vmatprep.subr.bf16.mxu0 %v2347_v0 }
 0x5cc   : > { %2073 = vmatpush3.bf16.msra.mxu0 %v2072_v54  ;;  %v1029_v54 = vld [vmem:[#allocation5 + $0x578] sm:$0xff] }
 0x5cd   : > { %2074 = vmatprep.subr.bf16.mxu0 %v2347_v0 }
 0x5d0   : > { %2076 = vmatpush3.bf16.msra.mxu0 %v2075_v62 }
 0x5d1   : > { %2077 = vmatprep.subr.bf16.mxu0 %v2347_v0 }
 0x5d4   : > { %2079 = vmatpush3.bf16.msra.mxu0 %v2078_v3 }
 0x5d5   : > { %2080 = vmatprep.subr.bf16.mxu0 %v2347_v0 }
 0x5d8   : > { %2082 = vmatpush3.bf16.msra.mxu0 %v2081_v6  ;;  %v1290_v6 = vld [vmem:[#allocation5 + $0x588] ss:$0 sm:$0xff] }
 0x5d9   : > { %2107 = vmatprep.subr.bf16.mxu0 %v2347_v0 }
 0x68e   : > { %v809_v56 = vpop.f32.mrb[6].mxu0 }
 0x68f   : > { %v810_v57 = vadd.f32 %v1287_v55, %v809_v56  ;;  %v1726_v58 = vpop.f32.mrb[7].mxu0  ;;  %v2126_v55 = vpack.c.bf16 %v1011_v52, %v1010_v50  ;;  %v1012_v56 = vld [vmem:[#allocation5 + $0x4f0] sm:$0xff] }
 0x690   : > { %v2105_v58 = vpack.c.bf16 %v1029_v54, %v1028_v53 }
 0x691   : > { %2205 = vtanh.f32 %v810_v57  ;;  %v1013_v57 = vld [vmem:[#allocation5 + $0x4f8] sm:$0xff] }
 0x69b   : > { %v2206_v59 = vpop.eup %2205 }
 0x69c   : > { %1760 = vmatmul.mubr.f32.vlgmr.msra.gmra.mrb[6].mxu1 %v2206_v59  ;;  %v2129_v59 = vpack.c.bf16 %v1013_v57, %v1012_v56 }
 0x69d   : > { %1829 = vmatprep.mubr.msk.f32.mxu1 %vm2348_vm0, %v2349_v1  ;;  %2085 = vmatpush3.bf16.msra.mxu1 %v2084_v9 }
 0x69e   : > { %2086 = vmatprep.subr.bf16.mxu1 %v2347_v0 }
 0x6a1   : > { %2088 = vmatpush3.bf16.msra.mxu1 %v2087_v12 }
 0x6a2   : > { %2089 = vmatprep.subr.bf16.mxu1 %v2347_v0 }
 0x6a5   : > { %2091 = vmatpush3.bf16.msra.mxu1 %v2090_v15 }
 0x6a6   : > { %2092 = vmatprep.subr.bf16.mxu1 %v2347_v0 }
 0x6a9   : > { %2094 = vmatpush3.bf16.msra.mxu1 %v2093_v18 }
 0x6aa   : > { %2095 = vmatprep.subr.bf16.mxu1 %v2347_v0 }
 0x6ad   : > { %2097 = vmatpush3.bf16.msra.mxu1 %v2096_v21 }
 0x6ae   : > { %2098 = vmatprep.subr.bf16.mxu1 %v2347_v0 }
 0x76f   : > { %v901_v23 = vpop.f32.mrb[6].mxu1 }
 0x770   : > { %v902_v24 = vadd.f32 %v1288_v22, %v901_v23  ;;  %v1761_v25 = vpop.f32.mrb[7].mxu1 }
 0x772   : > { %2207 = vtanh.f32 %v902_v24 }
 0x77c   : > { %v2208_v31 = vpop.eup %2207 }
 0x77d   : > { %1795 = vmatmul.mubr.f32.vlgmr.msra.gmra.mrb[8].mxu0 %v2208_v31 }
 0x77e   : > { %2109 = vmatpush3.bf16.msra.mxu0 %v2108_v28  ;;  %1864 = vmatprep.mubr.msk.f32.mxu0 %vm2348_vm0, %v2349_v1  ;;  %v1024_v1 = vld [vmem:[#allocation5 + $0x550] sm:$0xff] }
 0x77f   : > { %2110 = vmatprep.subr.bf16.mxu0 %v2347_v0  ;;  %v2099_v44 = vpack.c.bf16 %v1025_v43, %v1024_v1 }
 0x781   : > { %2100 = vmatpush3.bf16.msra.mxu1 %v2099_v44 }
 0x782   : > { %2112 = vmatpush3.bf16.msra.mxu0 %v2111_v32  ;;  %2101 = vmatprep.subr.bf16.mxu1 %v2347_v0 }
 0x783   : > { %2113 = vmatprep.subr.bf16.mxu0 %v2347_v0 }
 0x785   : > { %2103 = vmatpush3.bf16.msra.mxu1 %v2102_v51 }
 0x786   : > { %2115 = vmatpush3.bf16.msra.mxu0 %v2114_v35  ;;  %2104 = vmatprep.subr.bf16.mxu1 %v2347_v0 }
 0x787   : > { %2116 = vmatprep.subr.bf16.mxu0 %v2347_v0 }
 0x789   : > { %2106 = vmatpush3.bf16.msra.mxu1 %v2105_v58 }
 0x78a   : > { %2118 = vmatpush3.bf16.msra.mxu0 %v2117_v38 }
 0x78b   : > { %2119 = vmatprep.subr.bf16.mxu0 %v2347_v0 }
 0x78c   : > { %1830 = vmatmul.mubr.f32.vlgmr.msra.gmra.mrb[8].mxu1 %v2537_v41 }
 0x78e   : > { %2121 = vmatpush3.bf16.msra.mxu0 %v2120_v42 }
 0x78f   : > { %2122 = vmatprep.subr.bf16.mxu0 %v2347_v0 }
 0x792   : > { %2124 = vmatpush3.bf16.msra.mxu0 %v2123_v47 }
 0x793   : > { %2125 = vmatprep.subr.bf16.mxu0 %v2347_v0 }
 0x796   : > { %2127 = vmatpush3.bf16.msra.mxu0 %v2126_v55 }
 0x797   : > { %2128 = vmatprep.subr.bf16.mxu0 %v2347_v0 }
 0x79a   : > { %2130 = vmatpush3.bf16.msra.mxu0 %v2129_v59 }
 0x850   : > { %v993_v61 = vpop.f32.mrb[8].mxu0 }
 0x851   : > { %v994_v62 = vadd.f32 %v1289_v60, %v993_v61  ;;  %v1796_v63 = vpop.f32.mrb[9].mxu0 }
 0x853   : > { %2209 = vtanh.f32 %v994_v62 }
 0x85d   : > { %v2210_v2 = vpop.eup %2209 }
 0x85e   : > { %1865 = vmatmul.mubr.f32.vlgmr.msra.gmra.mrb[10].mxu0 %v2210_v2 }
 0x85f   : > { %v1096_v3 = vpop.f32.mrb[8].mxu1 }
 0x860   : > { %v1831_v4 = vpop.f32.mrb[9].mxu1 }
 0x931   : > { %v1166_v5 = vpop.f32.mrb[10].mxu0 }
 0x932   : > { %v1167_v0 = vadd.f32 %v1166_v5, %v1096_v3  ;;  %v1866_v7 = vpop.f32.mrb[11].mxu0 }
 0x934   : > { %v1175_v8 = vadd.f32 %v1290_v6, %v1167_v0 }
 0x936   : > { %2211 = vtanh.f32 %v1175_v8 }
 0x940   : > { %v2212_v41 = vpop.eup %2211 }
 0x941   : > { %1177 = vst [vmem:[%s173_s17] sm:$0xff] %v2212_v41 }
 0x942   : > { %2284 = shalt.err (!%p2281_p7)
}
 0x943   : > { %s2285_s6 = scalar_lea.hbm %s2639_s28, 128  ;;  %s2289_s24 = scalar_lea.hbm %s2685_s2, 256 }
 0x944   : > { %p2286_p9 = scmp.ne.s32.totalorder %s2639_s28, %s2285_s6  ;;  %p2290_p0 = scmp.lt.u32.totalorder %s2639_s28, %s2685_s2 }
 0x945   : > { %p2291_p11 = scmp.lt.u32.totalorder %s2289_s24, %s2285_s6  ;;  %p2293_p4 = scmp.lt.u32.totalorder %s2285_s6, %s2639_s28 }
 0x946   : > { %p2287_p2 = pnand %p2286_p9, %p2457_p12 }
 0x947   : > { %p2292_p1 = por %p2291_p11, %p2290_p0 }
 0x948   : > { %p2288_p5 = pneg %p2287_p2 }
 0x949   : > { %p2294_p6 = por %p2293_p4, %p2292_p1 }
 0x94b   : > { %p2295_p8 = pnand %p2294_p6, %p2288_p5 }
 0x94d   : > { %2298 = shalt.err (!%p2295_p8)
}
 0x94e   : > { %2137 = dma.vmem_to_hbm [thread:$0]  (%p2457_p12), %s2641_s27, 128, %s2639_s28, %s1179_s30  }
 0x94f PF: > { %s1204_s26 = sand.u32 1, %s2329_s9   ;;  %p2700_p10 = scmp.ne.s32.totalorder %s2690_s16, 0 }
 0x950   : > { %p2701_p13 = scmp.ge.s32.totalorder %s2341_s12, 2  ;;  %s1205_s19 = scalar_lea.sflag [#allocation4], %s1204_s26 }
 0x952   : > { %p2148_p3 = pnand %p2701_p13, %p2700_p10 }
 0x954   : > { %2324 = dma.done.wait (!%p2148_p3), %s1205_s19, 128  }
 0x955   : > { %2326 = vsyncadd (!%p2148_p3), %s1205_s19, 4294967168  ;;  %p16_p7 = scmp.ge.s32.totalorder %s2422_s21, 4   ;;  %s2702_s9 = smov %s2333_s10 }
 0x956   : > { %s2703_s10 = smov %s2337_s11  ;;  %s2704_s11 = smov %s2453_s8 }
 0x957   : > { %s2705_s12 = smov %s2422_s21  ;;  %18 = sbr.rel (!%p16_p7) target bundleno = 6 (0x6), region = 77 }
 0x95e   :  { %1210 = vsyncpa [#allocation3], 1 }
 0x95f   :  { %1212 = vsyncpa [#allocation3 + $0x1], 1 }
 0x960   :  { %1213 = vsyncpa [#allocation6], 1 }
 0x961   :  { %1214 = vsyncpa [#allocation4], 1 }
 0x962   :  { %1216 = vsyncpa [#allocation4 + $0x1], 1 }

</bundles_post_ra>
